<compile_context>
chip_gen: v7x
topology: tpu7x:2x2x1
jax: 0.10.0
libtpu: 0.0.40
codegen_flags: <defaults>
</compile_context>

<pallas_src>
import jax
import jax.numpy as jnp
from jax.experimental import pallas as pl
from jax.experimental.pallas import tpu as pltpu


TILE_M = 512          # flattened (n, ho, wo) rows per grid step (multiple of 128)
_EPS = 1e-3           # nn.BatchNorm2d(eps=0.001)
_VMEM_LIMIT = 32 * 1024 * 1024


def _round_up(v, m):
    return (v + m - 1) // m * m


# ----------------------------- Pallas kernels ------------------------------

def _conv_stats_kernel(wt_ref, ct_ref, y_ref, stats_ref):
    """One M-tile of y = W^T @ cols^T plus per-tile BN partial statistics.

    wt_ref   : (Cout_p, K_p)    bf16  fused transposed conv weights (VMEM resident)
    ct_ref   : (K_p, TILE_M)    bf16  transposed im2col tile (lane-dense)
    y_ref    : (Cout_p, TILE_M) bf16  conv output tile (lane-dense)
    stats_ref: (1, Cout_p, 2)   f32   per-tile [sum, sum_of_squares]
    """
    acc = jnp.dot(wt_ref[...], ct_ref[...],
                  preferred_element_type=jnp.float32)          # MXU, f32 acc
    y_ref[...] = acc.astype(y_ref.dtype)
    s = jnp.sum(acc, axis=1, keepdims=True)                    # (Cout_p, 1)
    ss = jnp.sum(acc * acc, axis=1, keepdims=True)             # (Cout_p, 1)
    stats_ref[0] = jnp.concatenate([s, ss], axis=1)            # (Cout_p, 2)


def _bn_relu_kernel(y_ref, scale_ref, shift_ref, o_ref):
    """Fused affine BN + ReLU on one lane-dense (Cout_p, TILE_M) tile (f32 math)."""
    y = y_ref[...].astype(jnp.float32)
    o_ref[...] = jnp.maximum(y * scale_ref[...] + shift_ref[...], 0.0)


# ----------------------------- Pallas wrappers ------------------------------

def fused_conv_stats(w_t, cols_t):
    cout_p, k_p = w_t.shape
    _, m_p = cols_t.shape
    num_tiles = m_p // TILE_M
    flops = 2 * cout_p * k_p * m_p
    bytes_accessed = 2 * (cout_p * k_p + k_p * m_p + cout_p * m_p) \
        + 4 * num_tiles * cout_p * 2
    return pl.pallas_call(
        _conv_stats_kernel,
        out_shape=(jax.ShapeDtypeStruct((cout_p, m_p), jnp.bfloat16),
                   jax.ShapeDtypeStruct((num_tiles, cout_p, 2), jnp.float32)),
        grid=(num_tiles,),
        in_specs=[pl.BlockSpec((cout_p, k_p), lambda i: (0, 0)),     # resident
                  pl.BlockSpec((k_p, TILE_M), lambda i: (0, i))],
        out_specs=(pl.BlockSpec((cout_p, TILE_M), lambda i: (0, i)),
                   pl.BlockSpec((1, cout_p, 2), lambda i: (i, 0, 0))),
        compiler_params=pltpu.CompilerParams(
            dimension_semantics=("parallel",),
            vmem_limit_bytes=_VMEM_LIMIT),
        cost_estimate=pl.CostEstimate(flops=flops, transcendentals=0,
                                      bytes_accessed=bytes_accessed),
    )(w_t, cols_t)


def fused_bn_relu(y, scale, shift):
    cout_p, m_p = y.shape
    num_tiles = m_p // TILE_M
    return pl.pallas_call(
        _bn_relu_kernel,
        out_shape=jax.ShapeDtypeStruct((cout_p, m_p), jnp.float32),
        grid=(num_tiles,),
        in_specs=[pl.BlockSpec((cout_p, TILE_M), lambda i: (0, i)),
                  pl.BlockSpec((cout_p, 1), lambda i: (0, 0)),
                  pl.BlockSpec((cout_p, 1), lambda i: (0, 0))],
        out_specs=pl.BlockSpec((cout_p, TILE_M), lambda i: (0, i)),
        compiler_params=pltpu.CompilerParams(
            dimension_semantics=("parallel",),
            vmem_limit_bytes=_VMEM_LIMIT),
    )(y, scale, shift)


# ------------------------------ forward pass --------------------------------

def inception_b_forward(x, p, eps=_EPS):
    """InceptionB forward: x (N, Cin, H, W) -> (N, 3*Cb, 2H, 2W)."""
    N, Cin, H, W = x.shape
    Cb = p["w5"].shape[1]
    k5, k3, stride = 5, 3, 2
    Ho5, Wo5 = (H - 1) * stride + k5, (W - 1) * stride + k5     # 2H+3, 2W+3
    Ho3, Wo3 = (H - 1) * stride + k3, (W - 1) * stride + k3     # 2H+1, 2W+1
    Hout, Wout = stride * H, stride * W

    # ---- shared bf16 NHWC dilate + pad (one copy for BOTH branches) ----------
    x_nhwc = jnp.transpose(x, (0, 2, 3, 1)).astype(jnp.bfloat16)
    Hd, Wd = (H - 1) * stride + 1, (W - 1) * stride + 1
    x_dil = jnp.zeros((N, Hd, Wd, Cin), jnp.bfloat16)
    x_dil = x_dil.at[:, ::stride, ::stride, :].set(x_nhwc)
    x_pad = jnp.pad(x_dil, ((0, 0), (k5 - 1, k5 - 1), (k5 - 1, k5 - 1), (0, 0)))

    # TODO(synk): the k*k patch extraction is still materialized in XLA (k^2 HBM
    # blowup); an in-kernel halo DMA pipeline (memory_space=pl.ANY + manual
    # make_async_copy) would remove it entirely.
    pats = [x_pad[:, kh:kh + Ho5, kw:kw + Wo5, :]
            for kh in range(k5) for kw in range(k5)]            # 25 x (N,Ho5,Wo5,Cin)
    cols = jnp.stack(pats, axis=0)                              # (25, N, Ho5, Wo5, Cin)
    cols = jnp.transpose(cols, (4, 0, 1, 2, 3))                 # (Cin, 25, N, Ho5, Wo5)

    K = Cin * k5 * k5
    M = N * Ho5 * Wo5
    K_p = _round_up(K, 8)
    M_p = _round_up(M, TILE_M)
    Cout = 2 * Cb
    Cout_p = _round_up(Cout, 8)

    cols_t = cols.reshape(K, M)                                 # K index = ci*25+kh*5+kw
    cols_t = jnp.pad(cols_t, ((0, K_p - K), (0, M_p - M)))      # zero pad: stats-safe

    # ---- fused, transposed weight matrix:  rows = [branch5 | branch3] --------
    w5f = jnp.flip(p["w5"], (2, 3))                             # (Cin, Cb, 5, 5)
    w5_t = jnp.transpose(w5f, (1, 0, 2, 3)).reshape(Cb, K)
    w3f = jnp.flip(p["w3"], (2, 3))                             # (Cin, Cb, 3, 3)
    w3_emb = jnp.zeros((Cb, Cin, k5, k5), p["w3"].dtype)
    w3_emb = w3_emb.at[:, :, 1:4, 1:4].set(jnp.transpose(w3f, (1, 0, 2, 3)))
    w3_t = w3_emb.reshape(Cb, K)
    w_t = jnp.concatenate([w5_t, w3_t], axis=0)                 # (2Cb, K)
    w_t = jnp.pad(w_t, ((0, Cout_p - Cout), (0, K_p - K))).astype(jnp.bfloat16)

    # ---- pass 1: tiled matmul + fused per-tile BN partial stats --------------
    y, stats = fused_conv_stats(w_t, cols_t)                    # y: (Cout_p, M_p) bf16

    # ---- combine partial stats (tiny) into per-channel scale / shift ---------
    sums = jnp.sum(stats[:, :, 0], axis=0)                      # (Cout_p,)
    sumsqs = jnp.sum(stats[:, :, 1], axis=0)
    cnt5 = jnp.float32(N * Ho5 * Wo5)                           # branch5 pre-crop count
    cnt3 = jnp.float32(N * Ho3 * Wo3)                           # branch3 pre-crop count
    counts = jnp.concatenate([jnp.full((Cb,), cnt5, jnp.float32),
                              jnp.full((Cb,), cnt3, jnp.float32),
                              jnp.ones((Cout_p - Cout,), jnp.float32)])
    gamma = jnp.concatenate([p["g5"], p["g3"],
                             jnp.zeros((Cout_p - Cout,), jnp.float32)])
    beta = jnp.concatenate([p["bt5"], p["bt3"],
                            jnp.zeros((Cout_p - Cout,), jnp.float32)])
    mean = sums / counts
    var = jnp.maximum(sumsqs / counts - mean * mean, 0.0)       # biased (training BN)
    scale = gamma * jax.lax.rsqrt(var + eps)
    shift = beta - mean * scale

    # ---- pass 2: single tiled fused BN + ReLU pass (lane-dense layout) -------
    yact = fused_bn_relu(y,
                         scale.reshape(Cout_p, 1).astype(jnp.float32),
                         shift.reshape(Cout_p, 1).astype(jnp.float32))

    # ---- crop / repack / concat (cheap XLA glue) ------------------------------
    yact = yact[:Cout, :M].reshape(Cout, N, Ho5, Wo5)
    yact = jnp.transpose(yact, (1, 0, 2, 3))                    # (N, 2Cb, Ho5, Wo5)
    yact = yact[:, :, 1:1 + Hout, 1:1 + Wout]                   # shared same-pad crop
    b5 = yact[:, :Cb]
    b3 = yact[:, Cb:Cout]
    return jnp.concatenate([b3, b5, b3], axis=1)                # (N, 3Cb, 2H, 2W)


# --------------------------- pure-JAX reference -----------------------------

def same_pad_crop(x, k, stride):
    pad_h = k - stride
    pad_w = k - stride
    pt, pb = pad_h // 2, pad_h - pad_h // 2
    pleft, pright = pad_w // 2, pad_w - pad_w // 2
    H, W = x.shape[2], x.shape[3]
    return x[:, :, pt:H - pb, pleft:W - pright]


def _ref_conv_transpose(x, w, k, stride=2):
    w_conv = jnp.transpose(jnp.flip(w, (2, 3)), (1, 0, 2, 3))   # (Cout, Cin, k, k)
    return jax.lax.conv_general_dilated(
        x, w_conv, window_strides=(1, 1),
        padding=((k - 1, k - 1), (k - 1, k - 1)),
        lhs_dilation=(stride, stride),
        dimension_numbers=("NCHW", "OIHW", "NCHW"),
        precision=jax.lax.Precision.HIGHEST)


def _ref_branch(x, w, gamma, beta, k, eps=_EPS):
    y = _ref_conv_transpose(x, w, k)
    mean = jnp.mean(y, axis=(0, 2, 3), keepdims=True)
    var = jnp.mean((y - mean) ** 2, axis=(0, 2, 3), keepdims=True)
    y = (y - mean) / jnp.sqrt(var + eps)
    y = y * gamma.reshape(1, -1, 1, 1) + beta.reshape(1, -1, 1, 1)
    return jnp.maximum(y, 0.0)


def _ref_forward(x, p):
    b5 = same_pad_crop(_ref_branch(x, p["w5"], p["g5"], p["bt5"], 5), 5, 2)
    b3 = same_pad_crop(_ref_branch(x, p["w3"], p["g3"], p["bt3"], 3), 3, 2)
    return jnp.concatenate([b3, b5, b3], axis=1)


# --------------------------------- main --------------------------------------

if __name__ == "__main__":
    keys = jax.random.split(jax.random.PRNGKey(0), 7)
    N, Cin, H, W = 2, 4, 16, 16
    Cb = 8  # branch_channels

    x = jax.random.normal(keys[0], (N, Cin, H, W), jnp.float32)
    params = {
        "w5": 0.1 * jax.random.normal(keys[1], (Cin, Cb, 5, 5), jnp.float32),
        "w3": 0.1 * jax.random.normal(keys[2], (Cin, Cb, 3, 3), jnp.float32),
        "g5": 1.0 + 0.1 * jax.random.normal(keys[3], (Cb,), jnp.float32),
        "bt5": 0.1 * jax.random.normal(keys[4], (Cb,), jnp.float32),
        "g3": 1.0 + 0.1 * jax.random.normal(keys[5], (Cb,), jnp.float32),
        "bt3": 0.1 * jax.random.normal(keys[6], (Cb,), jnp.float32),
    }

    fwd = jax.jit(inception_b_forward)
    out = jax.block_until_ready(fwd(x, params))

    assert out.shape == (N, 3 * Cb, 2 * H, 2 * W), out.shape
    assert out.dtype == jnp.float32

    ref = jax.block_until_ready(_ref_forward(x, params))
    max_err = float(jnp.max(jnp.abs(out - ref)))
    # tolerance accounts for bf16 MXU inputs / bf16 conv intermediate
    assert jnp.allclose(out, ref, rtol=3e-2, atol=3e-2), max_err

    print("KERNEL_OK")
</pallas_src>

<mosaic_0001>
module attributes {stable_mosaic.version = 11 : i64} {
  func.func @_conv_stats_kernel(%arg0: i32, %arg1: memref<16x104xbf16, #tpu.memory_space<vmem>>, %arg2: memref<104x512xbf16, #tpu.memory_space<vmem>>, %arg3: memref<16x512xbf16, #tpu.memory_space<vmem>>, %arg4: memref<1x16x2xf32, #tpu.memory_space<vmem>>) attributes {dimension_semantics = [#tpu.dimension_semantics<parallel>], iteration_bounds = array<i64: 5>, scalar_prefetch = 0 : i64, scratch_operands = 0 : i64, tpu.core_type = #tpu.core_type<tc>, window_params = [{pipeline_mode = #tpu.pipeline_mode<synchronous>, transform_indices = @transform_0, window_bounds = array<i64: 16, 104>}, {transform_indices = @transform_1, window_bounds = array<i64: 104, 512>}, {transform_indices = @transform_2, window_bounds = array<i64: 16, 512>}, {transform_indices = @transform_3, window_bounds = array<i64: 1, 16, 2>}]} {
    %c0 = arith.constant 0 : index
    %c0_0 = arith.constant 0 : index
    %0 = vector.load %arg1[%c0, %c0_0] : memref<16x104xbf16, #tpu.memory_space<vmem>>, vector<16x104xbf16>
    %c0_1 = arith.constant 0 : index
    %c0_2 = arith.constant 0 : index
    %1 = vector.load %arg2[%c0_1, %c0_2] : memref<104x512xbf16, #tpu.memory_space<vmem>>, vector<104x512xbf16>
    %cst = arith.constant dense<0.000000e+00> : vector<16x512xf32>
    %2 = tpu.matmul %0, %1, %cst {dimension_numbers = #tpu.dot_dimension_numbers<[1], [0], [0], [1], [0, 0, 1, 1], [], []>} : vector<16x104xbf16>, vector<104x512xbf16>, vector<16x512xf32> -> vector<16x512xf32>
    %3 = arith.truncf %2 : vector<16x512xf32> to vector<16x512xbf16>
    %c0_3 = arith.constant 0 : index
    %c0_4 = arith.constant 0 : index
    %4 = vector.load %arg3[%c0_3, %c0_4] : memref<16x512xbf16, #tpu.memory_space<vmem>>, vector<16x512xbf16>
    tpu.vector_store %arg3[%c0_3, %c0_4], %3 {strides = array<i32>} : memref<16x512xbf16, #tpu.memory_space<vmem>>, vector<16x512xbf16>,
    %cst_5 = arith.constant dense<0.000000e+00> : vector<16xf32>
    %5 = vector.multi_reduction <add>, %2, %cst_5 [1] : vector<16x512xf32> to vector<16xf32>
    %6 = vector.shape_cast %5 : vector<16xf32> to vector<16x1xf32>
    %7 = arith.mulf %2, %2 : vector<16x512xf32>
    %cst_6 = arith.constant dense<0.000000e+00> : vector<16xf32>
    %8 = vector.multi_reduction <add>, %7, %cst_6 [1] : vector<16x512xf32> to vector<16xf32>
    %9 = vector.shape_cast %8 : vector<16xf32> to vector<16x1xf32>
    %10 = tpu.concatenate %6, %9 in 1 : vector<16x1xf32>, vector<16x1xf32> -> vector<16x2xf32>
    %c0_7 = arith.constant 0 : index
    %c0_8 = arith.constant 0 : index
    %c0_9 = arith.constant 0 : index
    %11 = vector.load %arg4[%c0_7, %c0_8, %c0_9] : memref<1x16x2xf32, #tpu.memory_space<vmem>>, vector<1x16x2xf32>
    %12 = vector.shape_cast %11 : vector<1x16x2xf32> to vector<16x2xf32>
    %13 = vector.shape_cast %10 : vector<16x2xf32> to vector<1x16x2xf32>
    tpu.vector_store %arg4[%c0_7, %c0_8, %c0_9], %13 {strides = array<i32>} : memref<1x16x2xf32, #tpu.memory_space<vmem>>, vector<1x16x2xf32>,
    return
  }
  func.func @transform_0(%arg0: i32) -> (i32, i32) {
    %c0_i32 = arith.constant 0 : i32
    %c0_i32_0 = arith.constant 0 : i32
    %c0_i32_1 = arith.constant 0 : i32
    return %c0_i32, %c0_i32_0 : i32, i32
  }
  func.func @transform_1(%arg0: i32) -> (i32, i32) {
    %c0_i32 = arith.constant 0 : i32
    %c0_i32_0 = arith.constant 0 : i32
    return %c0_i32, %arg0 : i32, i32
  }
  func.func @transform_2(%arg0: i32) -> (i32, i32) {
    %c0_i32 = arith.constant 0 : i32
    %c0_i32_0 = arith.constant 0 : i32
    return %c0_i32, %arg0 : i32, i32
  }
  func.func @transform_3(%arg0: i32) -> (i32, i32, i32) {
    %c0_i32 = arith.constant 0 : i32
    %c0_i32_0 = arith.constant 0 : i32
    %c0_i32_1 = arith.constant 0 : i32
    return %arg0, %c0_i32, %c0_i32_0 : i32, i32, i32
  }
}

module attributes {stable_mosaic.version = 11 : i64} {
  func.func @_bn_relu_kernel(%arg0: i32, %arg1: memref<16x512xbf16, #tpu.memory_space<vmem>>, %arg2: memref<16x1xf32, #tpu.memory_space<vmem>>, %arg3: memref<16x1xf32, #tpu.memory_space<vmem>>, %arg4: memref<16x512xf32, #tpu.memory_space<vmem>>) attributes {dimension_semantics = [#tpu.dimension_semantics<parallel>], iteration_bounds = array<i64: 5>, scalar_prefetch = 0 : i64, scratch_operands = 0 : i64, tpu.core_type = #tpu.core_type<tc>, window_params = [{transform_indices = @transform_0, window_bounds = array<i64: 16, 512>}, {pipeline_mode = #tpu.pipeline_mode<synchronous>, transform_indices = @transform_1, window_bounds = array<i64: 16, 1>}, {pipeline_mode = #tpu.pipeline_mode<synchronous>, transform_indices = @transform_2, window_bounds = array<i64: 16, 1>}, {transform_indices = @transform_3, window_bounds = array<i64: 16, 512>}]} {
    %c0 = arith.constant 0 : index
    %c0_0 = arith.constant 0 : index
    %0 = vector.load %arg1[%c0, %c0_0] : memref<16x512xbf16, #tpu.memory_space<vmem>>, vector<16x512xbf16>
    %1 = arith.extf %0 : vector<16x512xbf16> to vector<16x512xf32>
    %c0_1 = arith.constant 0 : index
    %c0_2 = arith.constant 0 : index
    %2 = vector.load %arg2[%c0_1, %c0_2] : memref<16x1xf32, #tpu.memory_space<vmem>>, vector<16x1xf32>
    %3 = vector.broadcast %2 : vector<16x1xf32> to vector<16x512xf32>
    %4 = arith.mulf %1, %3 : vector<16x512xf32>
    %c0_3 = arith.constant 0 : index
    %c0_4 = arith.constant 0 : index
    %5 = vector.load %arg3[%c0_3, %c0_4] : memref<16x1xf32, #tpu.memory_space<vmem>>, vector<16x1xf32>
    %6 = vector.broadcast %5 : vector<16x1xf32> to vector<16x512xf32>
    %7 = arith.addf %4, %6 : vector<16x512xf32>
    %cst = arith.constant 0.000000e+00 : f32
    %8 = vector.broadcast %cst : f32 to vector<16x512xf32>
    %9 = arith.maximumf %7, %8 : vector<16x512xf32>
    %c0_5 = arith.constant 0 : index
    %c0_6 = arith.constant 0 : index
    %10 = vector.load %arg4[%c0_5, %c0_6] : memref<16x512xf32, #tpu.memory_space<vmem>>, vector<16x512xf32>
    tpu.vector_store %arg4[%c0_5, %c0_6], %9 {strides = array<i32>} : memref<16x512xf32, #tpu.memory_space<vmem>>, vector<16x512xf32>,
    return
  }
  func.func @transform_0(%arg0: i32) -> (i32, i32) {
    %c0_i32 = arith.constant 0 : i32
    %c0_i32_0 = arith.constant 0 : i32
    return %c0_i32, %arg0 : i32, i32
  }
  func.func @transform_1(%arg0: i32) -> (i32, i32) {
    %c0_i32 = arith.constant 0 : i32
    %c0_i32_0 = arith.constant 0 : i32
    %c0_i32_1 = arith.constant 0 : i32
    return %c0_i32, %c0_i32_0 : i32, i32
  }
  func.func @transform_2(%arg0: i32) -> (i32, i32) {
    %c0_i32 = arith.constant 0 : i32
    %c0_i32_0 = arith.constant 0 : i32
    %c0_i32_1 = arith.constant 0 : i32
    return %c0_i32, %c0_i32_0 : i32, i32
  }
  func.func @transform_3(%arg0: i32) -> (i32, i32) {
    %c0_i32 = arith.constant 0 : i32
    %c0_i32_0 = arith.constant 0 : i32
    return %c0_i32, %arg0 : i32, i32
  }
}

</mosaic_0001>

<bundles_post_ra>
// kernel: inception_b_forward.2
= control target key start
LH: loop header
LB: loop body
LE: loop exit
PB: predicated region body
PF: predicated region fallthrough
CT: control target
= control target key end

     0   :  { %s873_s12 = smov 0   ;;  %s875_s13 = smov 0   ;;  %s1039_s0 = inlined_call_operand.vmem [shape: bf16[16,104], index: 0, kind: input, shape index: {}]   ;;  %s1040_s1 = inlined_call_operand.vmem [shape: bf16[104,2560], index: 1, kind: input, shape index: {}]   ;;  %s1041_s2 = inlined_call_operand.vmem [shape: bf16[16,2560], index: 2, kind: output, shape index: {0}]   ;;  %s1042_s3 = inlined_call_operand.vmem [shape: f32[5,16,2], index: 3, kind: output, shape index: {1}]  }
   0x1   :  { %s877_s14 = smov 0  }
   0x2 LB: > { %s889_s15 = sadd.s32 4294967295, %s850_s14   ;;  %s892_s16 = sadd.s32 1, %s850_s14   ;;  %s850_s14 = sphi %s877_s14, %s1046_s14   ;;  %s846_s13 = sphi %s875_s13, %s1045_s13   ;;  %s842_s12 = sphi %s873_s12, %s1044_s12  }
   0x3   : > { %s39_s17 = ssub.s32 %s850_s14, %s892_s16  ;;  %s42_s18 = sadd.s32 1, %s846_s13 }
   0x4   : > { %p40_p0 = scmp.eq.s32.totalorder %s39_s17, 0  ;;  %p49_p1 = scmp.ne.s32.totalorder %s846_s13, %s842_s12 }
   0x5   : > { %p50_p2 = scmp.eq.s32.totalorder %s850_s14, 0  ;;  %p79_p3 = scmp.eq.s32.totalorder %s889_s15, 4 }
   0x6   : > { %s902_s19 = scalar_select %p40_p0, %s846_s13, %s42_s18  }
   0x7   : > { %p51_p4 = por %p50_p2, %p49_p1  ;;  %p904_p5 = por %p79_p3, %p49_p1 }
   0x8   : > { %p704_p6 = scmp.ge.s32.totalorder %s850_s14, 5 }
   0xa   : > { %130 = sbr.rel (%p704_p6) target bundleno = 35 (0x23), region = 20 }
  0x11   : > { %133 = sbr.rel (!%p51_p4) target bundleno = 35 (0x23), region = 24  ;;  %s135_s21 = sand.u32 (%p51_p4), 1, %s846_s13  }
  0x12   : > { %s753_s22 = sshll.u32 (%p51_p4), %s850_s14, 4  ;;  %s760_s23 = smul.u32 (%p51_p4), 208, %s135_s21 }
  0x13   : > { %s914_s26 = scalar_lea.vmem (%p51_p4), %s1040_s1, %s753_s22 }
  0x14   : > { %v153_v0 = vld [vmem:[%s914_s26] sm:$0xff] (%p51_p4)  ;;  %v155_v1 = vld [vmem:[%s914_s26 + $0x8] sm:$0xff] (%p51_p4)  ;;  %v157_v2 = vld [vmem:[%s914_s26 + $0x50] sm:$0xff] (%p51_p4)  ;;  %s922_s27 = scalar_lea.vmem (%p51_p4), [#allocation2], %s760_s23 }
  0x15   : > { %v159_v3 = vld [vmem:[%s914_s26 + $0x58] sm:$0xff] (%p51_p4)  ;;  %v161_v4 = vld [vmem:[%s914_s26 + $0xa0] sm:$0xff] (%p51_p4)  ;;  %v163_v5 = vld [vmem:[%s914_s26 + $0xa8] sm:$0xff] (%p51_p4)  ;;  %154 = vst [vmem:[%s922_s27] sm:$0xff] (%p51_p4), %v153_v0 }
  0x16   : > { %156 = vst [vmem:[%s922_s27 + $0x8] sm:$0xff] (%p51_p4), %v155_v1  ;;  %158 = vst [vmem:[%s922_s27 + $0x10] sm:$0xff] (%p51_p4), %v157_v2  ;;  %v165_v6 = vld [vmem:[%s914_s26 + $0xf0] sm:$0xff] (%p51_p4)  ;;  %v167_v7 = vld [vmem:[%s914_s26 + $0xf8] sm:$0xff] (%p51_p4) }
  0x17   : > { %160 = vst [vmem:[%s922_s27 + $0x18] sm:$0xff] (%p51_p4), %v159_v3  ;;  %162 = vst [vmem:[%s922_s27 + $0x20] sm:$0xff] (%p51_p4), %v161_v4  ;;  %v169_v8 = vld [vmem:[%s914_s26 + $0x140] sm:$0xff] (%p51_p4)  ;;  %v171_v9 = vld [vmem:[%s914_s26 + $0x148] sm:$0xff] (%p51_p4) }
  0x18   : > { %164 = vst [vmem:[%s922_s27 + $0x28] sm:$0xff] %v163_v5  ;;  %166 = vst [vmem:[%s922_s27 + $0x30] sm:$0xff] %v165_v6  ;;  %v173_v10 = vld [vmem:[%s914_s26 + $0x190] sm:$0xff]  ;;  %v175_v11 = vld [vmem:[%s914_s26 + $0x198] sm:$0xff] }
  0x19   : > { %168 = vst [vmem:[%s922_s27 + $0x38] sm:$0xff] %v167_v7  ;;  %170 = vst [vmem:[%s922_s27 + $0x40] sm:$0xff] %v169_v8  ;;  %v177_v12 = vld [vmem:[%s914_s26 + $0x1e0] sm:$0xff]  ;;  %v179_v13 = vld [vmem:[%s914_s26 + $0x1e8] sm:$0xff] }
  0x1a   : > { %172 = vst [vmem:[%s922_s27 + $0x48] sm:$0xff] %v171_v9  ;;  %174 = vst [vmem:[%s922_s27 + $0x50] sm:$0xff] %v173_v10  ;;  %v181_v14 = vld [vmem:[%s914_s26 + $0x230] sm:$0xff]  ;;  %v183_v15 = vld [vmem:[%s914_s26 + $0x238] sm:$0xff] }
  0x1b   : > { %176 = vst [vmem:[%s922_s27 + $0x58] sm:$0xff] %v175_v11  ;;  %178 = vst [vmem:[%s922_s27 + $0x60] sm:$0xff] %v177_v12  ;;  %v185_v16 = vld [vmem:[%s914_s26 + $0x280] sm:$0xff]  ;;  %v187_v17 = vld [vmem:[%s914_s26 + $0x288] sm:$0xff] }
  0x1c   : > { %180 = vst [vmem:[%s922_s27 + $0x68] sm:$0xff] %v179_v13  ;;  %182 = vst [vmem:[%s922_s27 + $0x70] sm:$0xff] %v181_v14  ;;  %v189_v18 = vld [vmem:[%s914_s26 + $0x2d0] sm:$0xff]  ;;  %v191_v19 = vld [vmem:[%s914_s26 + $0x2d8] sm:$0xff] }
  0x1d   : > { %184 = vst [vmem:[%s922_s27 + $0x78] sm:$0xff] %v183_v15  ;;  %186 = vst [vmem:[%s922_s27 + $0x80] sm:$0xff] %v185_v16  ;;  %v193_v20 = vld [vmem:[%s914_s26 + $0x320] sm:$0xff]  ;;  %v195_v21 = vld [vmem:[%s914_s26 + $0x328] sm:$0xff] }
  0x1e   : > { %188 = vst [vmem:[%s922_s27 + $0x88] sm:$0xff] %v187_v17  ;;  %190 = vst [vmem:[%s922_s27 + $0x90] sm:$0xff] %v189_v18  ;;  %v197_v22 = vld [vmem:[%s914_s26 + $0x370] sm:$0xff]  ;;  %v199_v23 = vld [vmem:[%s914_s26 + $0x378] sm:$0xff] }
  0x1f   : > { %192 = vst [vmem:[%s922_s27 + $0x98] sm:$0xff] %v191_v19  ;;  %194 = vst [vmem:[%s922_s27 + $0xa0] sm:$0xff] %v193_v20  ;;  %v201_v24 = vld [vmem:[%s914_s26 + $0x3c0] sm:$0xff]  ;;  %v203_v25 = vld [vmem:[%s914_s26 + $0x3c8] sm:$0xff] }
  0x20   : > { %196 = vst [vmem:[%s922_s27 + $0xa8] sm:$0xff] %v195_v21  ;;  %198 = vst [vmem:[%s922_s27 + $0xb0] sm:$0xff] %v197_v22 }
  0x21   : > { %200 = vst [vmem:[%s922_s27 + $0xb8] sm:$0xff] %v199_v23  ;;  %202 = vst [vmem:[%s922_s27 + $0xc0] sm:$0xff] %v201_v24 }
  0x22   : > { %204 = vst [vmem:[%s922_s27 + $0xc8] sm:$0xff] %v203_v25 }
  0x23 PF: > { %p707_p7 = scmp.ge.s32.totalorder %s850_s14, 1  ;;  %p209_p8 = scmp.lt.s32.totalorder %s850_s14, 6 }
  0x25   : > { %p210_p9 = pnand %p707_p7, %p209_p8 }
  0x26   : > { %s216_s28 = sand.u32 (!%p210_p9), 1, %s842_s12   ;;  %v852_v26 = vmov (!%p210_p9), 0   ;;  %vm418_vm0 = vcmask (!%p210_p9), 1043456   ;;  %v827_v59 = vld [vmem:[%s1039_s0] sm:$0xff] (!%p210_p9)   ;;  %vm414_vm1 = vcmask (!%p210_p9), 850944   ;;  %p245_p10 = scmp.lt.s32.totalorder (!%p210_p9), %s889_s15, 4 }
  0x27   : > { %213 = sbr.rel (%p210_p9) target bundleno = 442 (0x1ba), region = 47  ;;  %463 = vmatprep.mubr.bf16.mxu0 (!%p210_p9), %v852_v26  ;;  %506 = vmatprep.mubr.bf16.mxu1 (!%p210_p9), %v852_v26  ;;  %s708_s6 = sshll.u32 (!%p210_p9), %s216_s28, 5  ;;  %vm573_vm2 = vcmask (!%p210_p9), 7168   ;;  %vm576_vm3 = vcmask (!%p210_p9), 15360  }
  0x28   : > { %s761_s29 = smul.u32 (!%p210_p9), 208, %s216_s28  ;;  %s1008_s7 = scalar_lea.vmem (!%p210_p9), [#allocation3], %s708_s6 }
  0x2a   : > { %s975_s30 = scalar_lea.vmem (!%p210_p9), [#allocation2], %s761_s29 }
  0x2b   : > { %v787_v27 = vld [vmem:[%s975_s30 + $0x4] ss:$16 sps:$4 sm:$0xff] (!%p210_p9)   ;;  %v789_v28 = vld [vmem:[%s975_s30 + $0xc] ss:$16 sps:$4 sm:$0xff] (!%p210_p9)   ;;  %v791_v29 = vld [vmem:[%s975_s30] ss:$16 sps:$4 sm:$0xff] (!%p210_p9)  }
  0x2c   : > { %431 = vmatprep.subr.bf16.mxu0 (!%p210_p9), %v787_v27  ;;  %v792_v30 = vld [vmem:[%s975_s30 + $0x8] ss:$16 sps:$4 sm:$0xff] (!%p210_p9)   ;;  %474 = vmatprep.subr.bf16.mxu1 (!%p210_p9), %v789_v28  ;;  %v793_v31 = vld [vmem:[%s975_s30 + $0x24] ss:$16 sps:$4 sm:$0xff] (!%p210_p9)   ;;  %v795_v32 = vld [vmem:[%s975_s30 + $0x2c] ss:$16 sps:$4 sm:$0xff] (!%p210_p9)  }
  0x2d   : > { %432 = vmatpush1.bf16.msra.mxu0 (!%p210_p9), %v791_v29  ;;  %475 = vmatpush1.bf16.msra.mxu1 (!%p210_p9), %v792_v30  ;;  %v797_v33 = vld [vmem:[%s975_s30 + $0x20] ss:$16 sps:$4 sm:$0xff] (!%p210_p9)   ;;  %v798_v34 = vld [vmem:[%s975_s30 + $0x28] ss:$16 sps:$4 sm:$0xff] (!%p210_p9)   ;;  %v799_v35 = vld [vmem:[%s975_s30 + $0x44] ss:$16 sps:$4 sm:$0xff] (!%p210_p9)  }
  0x2e   : > { %433 = vmatprep.subr.bf16.mxu0 %v793_v31  ;;  %476 = vmatprep.subr.bf16.mxu1 %v795_v32  ;;  %v801_v36 = vld [vmem:[%s975_s30 + $0x4c] ss:$16 sps:$4 sm:$0xff]   ;;  %v803_v37 = vld [vmem:[%s975_s30 + $0x40] ss:$16 sps:$4 sm:$0xff]   ;;  %v804_v38 = vld [vmem:[%s975_s30 + $0x48] ss:$16 sps:$4 sm:$0xff]  }
  0x2f   : > { %v805_v39 = vld [vmem:[%s975_s30 + $0x64] ss:$16 sps:$4 sm:$0xff]   ;;  %v807_v40 = vld [vmem:[%s975_s30 + $0x6c] ss:$16 sps:$4 sm:$0xff]   ;;  %v809_v41 = vld [vmem:[%s975_s30 + $0x60] ss:$16 sps:$4 sm:$0xff]  }
  0x30   : > { %v810_v42 = vld [vmem:[%s975_s30 + $0x68] ss:$16 sps:$4 sm:$0xff]   ;;  %v811_v43 = vld [vmem:[%s975_s30 + $0x84] ss:$16 sps:$4 sm:$0xff]   ;;  %v813_v44 = vld [vmem:[%s975_s30 + $0x8c] ss:$16 sps:$4 sm:$0xff]  }
  0x31   : > { %434 = vmatpush1.bf16.msra.mxu0 %v797_v33  ;;  %477 = vmatpush1.bf16.msra.mxu1 %v798_v34  ;;  %v815_v45 = vld [vmem:[%s975_s30 + $0x80] ss:$16 sps:$4 sm:$0xff]   ;;  %v816_v46 = vld [vmem:[%s975_s30 + $0x88] ss:$16 sps:$4 sm:$0xff]   ;;  %v817_v47 = vld [vmem:[%s975_s30 + $0xa4] ss:$16 sps:$4 sm:$0xff]  }
  0x32   : > { %435 = vmatprep.subr.bf16.mxu0 %v799_v35  ;;  %478 = vmatprep.subr.bf16.mxu1 %v801_v36  ;;  %v819_v48 = vld [vmem:[%s975_s30 + $0xac] ss:$16 sps:$4 sm:$0xff]   ;;  %v277_v49 = vld [vmem:[%s975_s30 + $0xc0] sm:$0xff]  ;;  %v822_v52 = vld [vmem:[%s975_s30 + $0xa8] ss:$16 sps:$4 sm:$0xff]   ;;  %s246_s8 = scalar_select %p245_p10, %s889_s15, 4 }
  0x33   : > { %v278_v50 = vld [vmem:[%s975_s30 + $0xc8] sm:$0xff]  ;;  %v821_v51 = vld [vmem:[%s975_s30 + $0xa0] ss:$16 sps:$4 sm:$0xff]   ;;  %v737_v53 = vcombine.high %v277_v49, %v277_v49  ;;  %v736_v55 = vcombine.low %v277_v49, %v277_v49  ;;  %s759_s14 = sshll.u32 (%p904_p5), %s889_s15, 4 }
  0x34   : > { %v739_v54 = vcombine.high %v278_v50, %v278_v50  ;;  %v738_v56 = vcombine.low %v278_v50, %v278_v50  ;;  %s754_s9 = sshll.u32 %s246_s8, 4  ;;  %s593_s21 = scalar_lea.vmem (%p904_p5), %s1041_s2, %s759_s14 }
  0x35   : > { %436 = vmatpush1.bf16.msra.mxu0 %v803_v37  ;;  %479 = vmatpush1.bf16.msra.mxu1 %v804_v38  ;;  %v420_v57 = vsel %vm418_vm0, %v736_v55, 0  ;;  %s249_s12 = scalar_lea.vmem %s1042_s3, %s754_s9 }
  0x36   : > { %437 = vmatprep.subr.bf16.mxu0 %v805_v39  ;;  %480 = vmatprep.subr.bf16.mxu1 %v807_v40  ;;  %v426_v58 = vsel %vm418_vm0, %v738_v56, 0 }
  0x39   : > { %438 = vmatpush1.bf16.msra.mxu0 %v809_v41  ;;  %481 = vmatpush1.bf16.msra.mxu1 %v810_v42 }
  0x3a   : > { %439 = vmatprep.subr.bf16.mxu0 %v811_v43  ;;  %482 = vmatprep.subr.bf16.mxu1 %v813_v44 }
  0x3d   : > { %440 = vmatpush1.bf16.msra.mxu0 %v815_v45  ;;  %483 = vmatpush1.bf16.msra.mxu1 %v816_v46 }
  0x3e   : > { %441 = vmatprep.subr.bf16.mxu0 %v817_v47  ;;  %484 = vmatprep.subr.bf16.mxu1 %v819_v48 }
  0x41   : > { %442 = vmatpush1.bf16.msra.mxu0 %v821_v51  ;;  %485 = vmatpush1.bf16.msra.mxu1 %v822_v52 }
  0x42   : > { %740 = vmatprep.subr.msk.bf16.mxu0 %vm418_vm0, %v737_v53  ;;  %742 = vmatprep.subr.msk.bf16.mxu1 %vm418_vm0, %v739_v54 }
  0x45   : > { %444 = vmatpush1.bf16.msra.mxu0 %v420_v57  ;;  %487 = vmatpush1.bf16.msra.mxu1 %v426_v58 }
  0x48   : > { %741 = vmatmul.mubr.msk.bf16.vlgmr.msra.gmra.mrb[0].mxu0 %vm414_vm1, %v827_v59  ;;  %743 = vmatmul.mubr.msk.bf16.vlgmr.msra.gmra.mrb[0].mxu1 %vm414_vm1, %v827_v59 }
 0x11b   : > { %v465_v60 = vpop.f32.mrb[0].mxu0  ;;  %v508_v61 = vpop.f32.mrb[0].mxu1 }
 0x11c   : > { %v555_v62 = vmul.f32 %v465_v60, %v465_v60  ;;  %v467_v63 = vpop.f32.mrb[1].mxu0  ;;  %v510_v0 = vpop.f32.mrb[1].mxu1  ;;  %v557_v7 = vmul.f32 %v508_v61, %v508_v61 }
 0x11d   : > { %v755_v1 = vpack.c.bf16 %v467_v63, %v465_v60  ;;  %v545_v2 = vadd.f32 %v467_v63, %v465_v60  ;;  %v556_v3 = vmul.f32 %v467_v63, %v467_v63  ;;  %v756_v4 = vpack.c.bf16 %v510_v0, %v508_v61  ;;  %v469_v5 = vpop.f32.mrb[2].mxu0  ;;  %v512_v6 = vpop.f32.mrb[2].mxu1 }
 0x11e   : > { %v559_v8 = vmul.f32 %v469_v5, %v469_v5  ;;  %v471_v9 = vpop.f32.mrb[3].mxu0  ;;  %v514_v10 = vpop.f32.mrb[3].mxu1  ;;  %v561_v17 = vmul.f32 %v512_v6, %v512_v6  ;;  %v558_v21 = vmul.f32 %v510_v0, %v510_v0 }
 0x11f   : > { %541 = vst [vmem:[%s1008_s7] sm:$0xff] %v755_v1  ;;  %542 = vst [vmem:[%s1008_s7 + $0x8] sm:$0xff] %v756_v4  ;;  %v757_v11 = vpack.c.bf16 %v471_v9, %v469_v5  ;;  %v550_v12 = vadd.f32 %v471_v9, %v469_v5  ;;  %v560_v13 = vmul.f32 %v471_v9, %v471_v9 }
 0x120   : > { %v758_v14 = vpack.c.bf16 %v514_v10, %v512_v6  ;;  %v546_v15 = vadd.f32 %v545_v2, %v508_v61  ;;  %v563_v16 = vadd.f32 %v556_v3, %v555_v62  ;;  %v562_v23 = vmul.f32 %v514_v10, %v514_v10 }
 0x121   : > { %543 = vst [vmem:[%s1008_s7 + $0x10] sm:$0xff] %v757_v11  ;;  %v568_v18 = vadd.f32 %v560_v13, %v559_v8  ;;  %v551_v19 = vadd.f32 %v550_v12, %v512_v6 }
 0x122   : > { %544 = vst [vmem:[%s1008_s7 + $0x18] sm:$0xff] %v758_v14  ;;  %v547_v20 = vadd.f32 %v546_v15, %v510_v0  ;;  %v564_v22 = vadd.f32 %v563_v16, %v557_v7 }
 0x123   : > { %v552_v24 = vadd.f32 %v551_v19, %v514_v10  ;;  %v569_v25 = vadd.f32 %v568_v18, %v561_v17 }
 0x124   : > { %548 = vadd.xlane.f32.xlu0 %v547_v20  ;;  %v565_v26 = vadd.f32 %v564_v22, %v558_v21 }
 0x125   : > { %v570_v27 = vadd.f32 %v569_v25, %v562_v23 }
 0x126   : > { %566 = vadd.xlane.f32.xlu1 %v565_v26  ;;  %v606_v34 = vld [vmem:[%s1008_s7] sm:$0xff] (%p904_p5)  ;;  %v608_v35 = vld [vmem:[%s1008_s7 + $0x8] sm:$0xff] (%p904_p5) }
 0x127   : > { %607 = vst [vmem:[%s593_s21] sm:$0xff] (%p904_p5), %v606_v34  ;;  %609 = vst [vmem:[%s593_s21 + $0x8] sm:$0xff] (%p904_p5), %v608_v35 }
 0x128   : > { %553 = vadd.xlane.f32.xlu0 %v552_v24  ;;  %v610_v36 = vld [vmem:[%s1008_s7 + $0x10] sm:$0xff] (%p904_p5) }
 0x129   : > { %v612_v37 = vld [vmem:[%s1008_s7 + $0x18] sm:$0xff] (%p904_p5)  ;;  %611 = vst [vmem:[%s593_s21 + $0x50] sm:$0xff] (%p904_p5), %v610_v36 }
 0x12a   : > { %571 = vadd.xlane.f32.xlu1 %v570_v27  ;;  %613 = vst [vmem:[%s593_s21 + $0x58] sm:$0xff] (%p904_p5), %v612_v37 }
 0x1b1   : > { %v549_v28 = vpop.xlane.xlu0 %548 }
 0x1b3   : > { %v567_v29 = vpop.xlane.xlu1 %566  ;;  %590 = sbr.rel (!%p904_p5) target bundleno = 442 (0x1ba), region = 55 }
 0x1b4   : > { %v574_v30 = vsel %vm573_vm2, %v549_v28, %v567_v29 }
 0x1b5   : > { %577 = vst.msk [vmem:[%s249_s12] sm:$0xff] %vm576_vm3, %v574_v30  ;;  %v554_v31 = vpop.xlane.xlu0 %553 }
 0x1b7   : > { %v572_v32 = vpop.xlane.xlu1 %571 }
 0x1b8   : > { %v575_v33 = vsel %vm573_vm2, %v554_v31, %v572_v32 }
 0x1b9   : > { %578 = vst.msk [vmem:[%s249_s12 + $0x8] sm:$0xff] %vm576_vm3, %v575_v33 }
 0x1ba PF: > { %p11_p11 = scmp.ge.s32.totalorder %s892_s16, 7   ;;  %s1044_s12 = smov %s846_s13 }
 0x1bb   : > { %s1045_s13 = smov %s902_s19  ;;  %s1046_s14 = smov %s892_s16 }
 0x1bc   :  { %13 = sbr.rel (!%p11_p11) target bundleno = 2 (0x2), region = 121 }

// kernel: inception_b_forward.3
= control target key start
LH: loop header
LB: loop body
LE: loop exit
PB: predicated region body
PF: predicated region fallthrough
CT: control target
= control target key end

     0   :  { %s447_s12 = smov 0   ;;  %s449_s13 = smov 0   ;;  %s537_s0 = inlined_call_operand.vmem [shape: bf16[16,2560], index: 0, kind: input, shape index: {}]   ;;  %s538_s1 = inlined_call_operand.vmem [shape: f32[16,1], index: 1, kind: input, shape index: {}]   ;;  %s539_s2 = inlined_call_operand.vmem [shape: f32[16,1], index: 2, kind: input, shape index: {}]   ;;  %s540_s3 = inlined_call_operand.vmem [shape: f32[16,2560], index: 3, kind: output, shape index: {}]  }
   0x1   :  { %s451_s14 = smov 0  }
   0x2 LB: > { %s358_s15 = sadd.s32 4294967295, %s424_s14   ;;  %s464_s16 = sadd.s32 1, %s424_s14   ;;  %s424_s14 = sphi %s451_s14, %s544_s14   ;;  %s420_s13 = sphi %s449_s13, %s543_s13   ;;  %s416_s12 = sphi %s447_s12, %s542_s12  }
   0x3   : > { %s17_s17 = ssub.s32 %s424_s14, %s464_s16  ;;  %s20_s18 = sadd.s32 1, %s420_s13 }
   0x4   : > { %p18_p0 = scmp.eq.s32.totalorder %s17_s17, 0  ;;  %p27_p1 = scmp.ne.s32.totalorder %s420_s13, %s416_s12 }
   0x5   : > { %p28_p2 = scmp.eq.s32.totalorder %s424_s14, 0  ;;  %p99_p3 = scmp.eq.s32.totalorder %s358_s15, 4 }
   0x6   : > { %s475_s19 = scalar_select %p18_p0, %s420_s13, %s20_s18  }
   0x7   : > { %p29_p4 = por %p28_p2, %p27_p1  ;;  %p477_p5 = por %p99_p3, %p27_p1 }
   0x8   : > { %p361_p6 = scmp.ge.s32.totalorder %s424_s14, 5 }
   0xa   : > { %127 = sbr.rel (%p361_p6) target bundleno = 24 (0x18), region = 24 }
  0x11   : > { %130 = sbr.rel (!%p29_p4) target bundleno = 24 (0x18), region = 28  ;;  %s132_s21 = sand.u32 (%p29_p4), 1, %s420_s13  }
  0x12   : > { %s373_s22 = sshll.u32 (%p29_p4), %s424_s14, 4  ;;  %s362_s23 = sshll.u32 (%p29_p4), %s132_s21, 5 }
  0x13   : > { %s137_s26 = scalar_lea.vmem (%p29_p4), %s537_s0, %s373_s22  ;;  %s134_s27 = scalar_lea.vmem (%p29_p4), [#allocation2], %s362_s23 }
  0x14   : > { %v150_v0 = vld [vmem:[%s137_s26] sm:$0xff] (%p29_p4)  ;;  %v152_v1 = vld [vmem:[%s137_s26 + $0x8] sm:$0xff] (%p29_p4)  ;;  %v154_v2 = vld [vmem:[%s137_s26 + $0x50] sm:$0xff] (%p29_p4) }
  0x15   : > { %151 = vst [vmem:[%s134_s27] sm:$0xff] (%p29_p4), %v150_v0  ;;  %153 = vst [vmem:[%s134_s27 + $0x8] sm:$0xff] (%p29_p4), %v152_v1  ;;  %v156_v3 = vld [vmem:[%s137_s26 + $0x58] sm:$0xff] (%p29_p4) }
  0x16   : > { %155 = vst [vmem:[%s134_s27 + $0x10] sm:$0xff] (%p29_p4), %v154_v2  ;;  %157 = vst [vmem:[%s134_s27 + $0x18] sm:$0xff] (%p29_p4), %v156_v3 }
  0x18 PF: > { %p365_p7 = scmp.ge.s32.totalorder %s424_s14, 1  ;;  %p162_p8 = scmp.lt.s32.totalorder %s424_s14, 6 }
  0x1a   : > { %p163_p9 = pnand %p365_p7, %p162_p8 }
  0x1b   : > { %v225_v4 = vld [vmem:[%s539_s2] sm:$0xff] (!%p163_p9)  ;;  %v426_v6 = vmov (!%p163_p9), 0   ;;  %v226_v7 = vld [vmem:[%s539_s2 + $0x8] sm:$0xff] (!%p163_p9)  ;;  %s169_s9 = sand.u32 (!%p163_p9), 1, %s416_s12  }
  0x1c   : > { %166 = sbr.rel (%p163_p9) target bundleno = 178 (0xb2), region = 51  ;;  %v205_v5 = vld [vmem:[%s538_s1] sm:$0xff] (!%p163_p9)  ;;  %401 = vset.pattern.permute.xlu1 (!%p163_p9), %v426_v6  ;;  %400 = vset.pattern.permute.xlu0 (!%p163_p9), %v426_v6  ;;  %v206_v8 = vld [vmem:[%s538_s1 + $0x8] sm:$0xff] (!%p163_p9)  ;;  %s366_s10 = sshll.u32 (!%p163_p9), %s169_s9, 5 }
  0x1d   : > { %229 = vperm.xlu1 (!%p163_p9), %401, %v225_v4   ;;  %209 = vperm.xlu0 (!%p163_p9), %400, %v205_v5   ;;  %s171_s11 = scalar_lea.vmem (!%p163_p9), [#allocation2], %s366_s10  ;;  %s367_s17 = sshll.u32 (!%p163_p9), %s169_s9, 6 }
  0x1e   : > { %v193_v9 = vld [vmem:[%s171_s11] sm:$0xff] (!%p163_p9)  ;;  %v194_v10 = vld [vmem:[%s171_s11 + $0x8] sm:$0xff] (!%p163_p9)  ;;  %v195_v15 = vld [vmem:[%s171_s11 + $0x10] sm:$0xff] (!%p163_p9)  ;;  %s502_s12 = scalar_lea.vmem (!%p163_p9), [#allocation3], %s367_s17 }
  0x1f   : > { %v197_v11 = vunpack.c.l.bf16 (!%p163_p9), %v193_v9  ;;  %v198_v12 = vunpack.c.h.bf16 (!%p163_p9), %v193_v9  ;;  %v199_v13 = vunpack.c.l.bf16 (!%p163_p9), %v194_v10  ;;  %v200_v14 = vunpack.c.h.bf16 (!%p163_p9), %v194_v10  ;;  %v196_v16 = vld [vmem:[%s171_s11 + $0x18] sm:$0xff] (!%p163_p9) }
  0x20   : > { %v201_v23 = vunpack.c.l.bf16 (!%p163_p9), %v195_v15  ;;  %v202_v24 = vunpack.c.h.bf16 (!%p163_p9), %v195_v15  ;;  %v203_v25 = vunpack.c.l.bf16 (!%p163_p9), %v196_v16  ;;  %v204_v26 = vunpack.c.h.bf16 (!%p163_p9), %v196_v16 }
  0x21   : > { %234 = vperm.xlu1 (!%p163_p9), %401, %v226_v7   ;;  %214 = vperm.xlu0 (!%p163_p9), %400, %v206_v8  }
  0x23   : > { %s374_s18 = sshll.u32 (%p477_p5), %s358_s15, 5 }
  0x24   : > { %s270_s23 = scalar_lea.vmem (%p477_p5), %s540_s3, %s374_s18 }
  0x9c   : > { %v210_v17 = vpop.permute.xlu0 %209  ;;  %v230_v18 = vpop.permute.xlu1 %229 }
  0x9d   : > { %v217_v19 = vmul.f32 %v210_v17, %v197_v11  ;;  %v218_v20 = vmul.f32 %v210_v17, %v198_v12  ;;  %v219_v21 = vmul.f32 %v210_v17, %v199_v13  ;;  %v220_v22 = vmul.f32 %v210_v17, %v200_v14 }
  0x9f   : > { %v237_v27 = vadd.f32 %v230_v18, %v217_v19  ;;  %v238_v28 = vadd.f32 %v230_v18, %v218_v20  ;;  %v239_v29 = vadd.f32 %v230_v18, %v219_v21  ;;  %v240_v30 = vadd.f32 %v230_v18, %v220_v22 }
  0xa0   : > { %v215_v31 = vpop.permute.xlu0 %214  ;;  %v235_v40 = vpop.permute.xlu1 %234 }
  0xa1   : > { %v245_v32 = vmax.f32 %v237_v27, 0.0  ;;  %v246_v33 = vmax.f32 %v238_v28, 0.0  ;;  %v247_v34 = vmax.f32 %v239_v29, 0.0  ;;  %v248_v35 = vmax.f32 %v240_v30, 0.0 }
  0xa2   : > { %v221_v36 = vmul.f32 %v215_v31, %v201_v23  ;;  %v222_v37 = vmul.f32 %v215_v31, %v202_v24  ;;  %v223_v38 = vmul.f32 %v215_v31, %v203_v25  ;;  %v224_v39 = vmul.f32 %v215_v31, %v204_v26 }
  0xa3   : > { %253 = vst [vmem:[%s502_s12] sm:$0xff] %v245_v32  ;;  %254 = vst [vmem:[%s502_s12 + $0x8] sm:$0xff] %v246_v33  ;;  %267 = sbr.rel (!%p477_p5) target bundleno = 178 (0xb2), region = 59 }
  0xa4   : > { %255 = vst [vmem:[%s502_s12 + $0x10] sm:$0xff] %v247_v34  ;;  %256 = vst [vmem:[%s502_s12 + $0x18] sm:$0xff] %v248_v35  ;;  %v241_v41 = vadd.f32 %v235_v40, %v221_v36  ;;  %v242_v42 = vadd.f32 %v235_v40, %v222_v37  ;;  %v243_v43 = vadd.f32 %v235_v40, %v223_v38 }
  0xa5   : > { %v244_v44 = vadd.f32 %v235_v40, %v224_v39 }
  0xa6   : > { %v249_v45 = vmax.f32 %v241_v41, 0.0  ;;  %v250_v46 = vmax.f32 %v242_v42, 0.0  ;;  %v251_v47 = vmax.f32 %v243_v43, 0.0 }
  0xa7   : > { %v252_v48 = vmax.f32 %v244_v44, 0.0 }
  0xa8   : > { %257 = vst [vmem:[%s502_s12 + $0x20] sm:$0xff] %v249_v45  ;;  %258 = vst [vmem:[%s502_s12 + $0x28] sm:$0xff] %v250_v46 }
  0xa9   : > { %259 = vst [vmem:[%s502_s12 + $0x30] sm:$0xff] %v251_v47  ;;  %260 = vst [vmem:[%s502_s12 + $0x38] sm:$0xff] %v252_v48 }
  0xaa   : > { %v283_v49 = vld [vmem:[%s502_s12] sm:$0xff]  ;;  %v285_v50 = vld [vmem:[%s502_s12 + $0x8] sm:$0xff] }
  0xab   : > { %v287_v51 = vld [vmem:[%s502_s12 + $0x10] sm:$0xff]  ;;  %v289_v52 = vld [vmem:[%s502_s12 + $0x18] sm:$0xff]  ;;  %284 = vst [vmem:[%s270_s23] sm:$0xff] %v283_v49  ;;  %286 = vst [vmem:[%s270_s23 + $0x8] sm:$0xff] %v285_v50 }
  0xac   : > { %288 = vst [vmem:[%s270_s23 + $0x10] sm:$0xff] %v287_v51  ;;  %290 = vst [vmem:[%s270_s23 + $0x18] sm:$0xff] %v289_v52 }
  0xaf   : > { %v291_v53 = vld [vmem:[%s502_s12 + $0x20] sm:$0xff]  ;;  %v293_v54 = vld [vmem:[%s502_s12 + $0x28] sm:$0xff] }
  0xb0   : > { %292 = vst [vmem:[%s270_s23 + $0xa0] sm:$0xff] %v291_v53  ;;  %294 = vst [vmem:[%s270_s23 + $0xa8] sm:$0xff] %v293_v54  ;;  %v295_v55 = vld [vmem:[%s502_s12 + $0x30] sm:$0xff]  ;;  %v297_v56 = vld [vmem:[%s502_s12 + $0x38] sm:$0xff] }
  0xb1   : > { %296 = vst [vmem:[%s270_s23 + $0xb0] sm:$0xff] %v295_v55  ;;  %298 = vst [vmem:[%s270_s23 + $0xb8] sm:$0xff] %v297_v56 }
  0xb2 PF: > { %p10_p10 = scmp.ge.s32.totalorder %s464_s16, 7   ;;  %s542_s12 = smov %s420_s13 }
  0xb3   : > { %s543_s13 = smov %s475_s19  ;;  %s544_s14 = smov %s464_s16 }
  0xb4   :  { %12 = sbr.rel (!%p10_p10) target bundleno = 2 (0x2), region = 113 }

</bundles_post_ra>
